<compile_context>
chip_gen: v7x
topology: tpu7x:2x2x1
jax: 0.10.0
libtpu: 0.0.40
codegen_flags: <defaults>
</compile_context>

<pallas_src>
import functools

import jax
import jax.numpy as jnp
from jax.experimental import pallas as pl
from jax.experimental.pallas import tpu as pltpu


# ---------------------------------------------------------------------------
# Kernels
# ---------------------------------------------------------------------------

def _sobel_core(x, up, down, left, right, o_ref):
    """Separable Sobel: Kx = [1,2,1]^T (x) [-1,0,1], Ky = [-1,0,1]^T (x) [1,2,1]."""
    u = up(x)
    d = down(x)
    sv = u + 2.0 * x + d                     # vertical [1, 2, 1] smooth
    dv = d - u                               # vertical [-1, 0, 1] difference
    gx = right(sv) - left(sv)                # horizontal [-1, 0, 1]
    gy = left(dv) + 2.0 * dv + right(dv)     # horizontal [1, 2, 1]
    # sqrt(gx^2 + gy^2) > 0.5  <=>  gx^2 + gy^2 > 0.25  (no EUP sqrt needed)
    o_ref[...] = ((gx * gx + gy * gy) > 0.25).astype(jnp.float32)


def _sobel_kernel_rows(x_ref, o_ref, *, img_h, img_w):
    """Layout A: block = (n_imgs*H, W). Sublanes = stacked image rows, lanes = W.

    conv padding=1 zero halos are emulated with 1-D boundary masks:
      * rows need an (R,1) iota (% H) because several images share the block;
      * columns need only a (1,L) iota (block width == W, so no modulo).
    """
    x = x_ref[...]
    R, L = x.shape

    row_in = jax.lax.broadcasted_iota(jnp.int32, (R, 1), 0) % img_h
    top = row_in == 0                        # (R, 1)
    bot = row_in == (img_h - 1)              # (R, 1)
    col = jax.lax.broadcasted_iota(jnp.int32, (1, L), 1)
    lft = col == 0                           # (1, L)
    rgt = col == (img_w - 1)                 # (1, L)

    zrow = jnp.zeros((1, L), jnp.float32)
    zcol = jnp.zeros((R, 1), jnp.float32)

    def up(a):     # a[r-1, c]; zero above each image's top row
        return jnp.where(top, 0.0, jnp.concatenate([zrow, a[:-1, :]], axis=0))

    def down(a):   # a[r+1, c]; zero below each image's bottom row
        return jnp.where(bot, 0.0, jnp.concatenate([a[1:, :], zrow], axis=0))

    def left(a):   # a[r, c-1]; zero left of column 0
        return jnp.where(lft, 0.0, jnp.concatenate([zcol, a[:, :-1]], axis=1))

    def right(a):  # a[r, c+1]; zero right of column W-1
        return jnp.where(rgt, 0.0, jnp.concatenate([a[:, 1:], zcol], axis=1))

    _sobel_core(x, up, down, left, right, o_ref)


def _sobel_kernel_flat(x_ref, o_ref, *, img_h, img_w):
    """Layout B: block = (n_imgs, H*W). Sublanes = images, lanes = flat pixels.

    All four neighbour accesses are lane shifts (+-1, +-W); all boundary masks
    come from one (1, L) lane iota shared across the sublane (image) axis.
    Out-of-image values pulled in by the shifts land only at masked positions,
    so the shifted+masked result reproduces the conv's zero halo exactly.
    """
    x = x_ref[...]
    R, L = x.shape                           # L == img_h * img_w

    idx = jax.lax.broadcasted_iota(jnp.int32, (1, L), 1)
    col = idx % img_w
    top = idx < img_w                        # h == 0
    bot = idx >= (L - img_w)                 # h == H-1
    lft = col == 0                           # w == 0
    rgt = col == (img_w - 1)                 # w == W-1

    z1 = jnp.zeros((R, 1), jnp.float32)
    zw = jnp.zeros((R, img_w), jnp.float32)

    def up(a):     # pixel (h-1, w)  == lane i - W
        return jnp.where(top, 0.0, jnp.concatenate([zw, a[:, :-img_w]], axis=1))

    def down(a):   # pixel (h+1, w)  == lane i + W
        return jnp.where(bot, 0.0, jnp.concatenate([a[:, img_w:], zw], axis=1))

    def left(a):   # pixel (h, w-1)  == lane i - 1
        return jnp.where(lft, 0.0, jnp.concatenate([z1, a[:, :-1]], axis=1))

    def right(a):  # pixel (h, w+1)  == lane i + 1
        return jnp.where(rgt, 0.0, jnp.concatenate([a[:, 1:], z1], axis=1))

    _sobel_core(x, up, down, left, right, o_ref)


# ---------------------------------------------------------------------------
# Wrapper
# ---------------------------------------------------------------------------

_TARGET_BLOCK_BYTES = 4 * 1024 * 1024        # ~4 MiB tiles (85%-roofline region)
_COMPILER_PARAMS = pltpu.CompilerParams(
    dimension_semantics=("parallel",),       # v7x: shard the grid across 2 TCs
    vmem_limit_bytes=48 * 1024 * 1024,       # double-buffered 4 MiB tiles << 48 MiB
)


def _pick_imgs_per_block(n_imgs, cap, unit, align):
    """How many whole images go into one block.

    Prefers the largest divisor d of n_imgs with d <= cap and (d*unit) % align
    == 0 (8-aligned sublane block dim).  If none exists, tries the smallest
    aligned divisor above the cap (keeps the block as small as alignment
    allows), and finally falls back to the always-legal full-extent block.
    """
    cap = max(1, min(n_imgs, cap))
    best = None
    for d in range(1, cap + 1):
        if n_imgs % d == 0 and (d * unit) % align == 0:
            best = d
    if best is not None:
        return best
    for d in range(cap + 1, n_imgs + 1):
        if n_imgs % d == 0 and (d * unit) % align == 0:
            return d
    return n_imgs


def edge_detection(x, *, target_block_bytes=_TARGET_BLOCK_BYTES):
    """x: (N, 1, H, W) -> (N, 1, H, W) float32 mask (Sobel magnitude > 0.5)."""
    N, C, H, W = x.shape
    assert C == 1, "edgeDetection expects a single input channel"
    x = x.astype(jnp.float32)

    bytes_per_img = H * W * 4
    cap = max(1, target_block_bytes // max(1, bytes_per_img))
    # Prefer >= 2 grid steps so the "parallel" axis can use both v7x TensorCores.
    if N >= 2:
        cap = min(cap, max(1, N // 2))

    # TODO(synk): a single image larger than the VMEM block budget (huge H*W)
    # would need a row-tiled path with a 2-row halo via manual make_async_copy.

    if W >= 128:
        # Layout A: stack image rows along sublanes -> (N*H, W); the lane axis
        # is already >= 128 wide and the reshape is free (contiguous).
        kernel = functools.partial(_sobel_kernel_rows, img_h=H, img_w=W)
        n_blk = _pick_imgs_per_block(N, cap, H, 8)
        tile_r = n_blk * H
        arr = x.reshape(N * H, W)
        out = pl.pallas_call(
            kernel,
            out_shape=jax.ShapeDtypeStruct((N * H, W), jnp.float32),
            grid=(N // n_blk,),
            in_specs=[pl.BlockSpec((tile_r, W), lambda i: (i, 0))],
            out_specs=pl.BlockSpec((tile_r, W), lambda i: (i, 0)),
            compiler_params=_COMPILER_PARAMS,
        )(arr)
        return out.reshape(N, 1, H, W)

    # Layout B (narrow images, W < 128): one image per sublane row, flattened
    # pixels along lanes -> (N, H*W).  Free contiguous reshape (no host
    # transposes); stores are lane-dense whenever H*W >= 128.
    kernel = functools.partial(_sobel_kernel_flat, img_h=H, img_w=W)
    n_blk = _pick_imgs_per_block(N, cap, 1, 8)
    arr = x.reshape(N, H * W)
    out = pl.pallas_call(
        kernel,
        out_shape=jax.ShapeDtypeStruct((N, H * W), jnp.float32),
        grid=(N // n_blk,),
        in_specs=[pl.BlockSpec((n_blk, H * W), lambda i: (i, 0))],
        out_specs=pl.BlockSpec((n_blk, H * W), lambda i: (i, 0)),
        compiler_params=_COMPILER_PARAMS,
    )(arr)
    return out.reshape(N, 1, H, W)


# ---------------------------------------------------------------------------
# Reference + self-test
# ---------------------------------------------------------------------------

def _reference(x):
    """Pure-JAX reference mirroring the PyTorch forward."""
    wx = jnp.array([[-1.0, 0.0, 1.0], [-2.0, 0.0, 2.0], [-1.0, 0.0, 1.0]],
                   dtype=jnp.float32)
    wy = jnp.array([[-1.0, -2.0, -1.0], [0.0, 0.0, 0.0], [1.0, 2.0, 1.0]],
                   dtype=jnp.float32)
    gx = jax.lax.conv_general_dilated(
        x, wx[None, None], (1, 1), ((1, 1), (1, 1)),
        dimension_numbers=("NCHW", "OIHW", "NCHW"))
    gy = jax.lax.conv_general_dilated(
        x, wy[None, None], (1, 1), ((1, 1), (1, 1)),
        dimension_numbers=("NCHW", "OIHW", "NCHW"))
    return (jnp.sqrt(gx ** 2 + gy ** 2) > 0.5).astype(jnp.float32)


if __name__ == "__main__":
    run = jax.jit(edge_detection)

    # Primary shape consistent with the module: batch=2, channels=1, spatial=16
    # (exercises Layout B: narrow images flattened to (N, H*W)).
    x_small = jax.random.normal(jax.random.PRNGKey(0), (2, 1, 16, 16),
                                dtype=jnp.float32)
    out_small = run(x_small)
    jax.block_until_ready(out_small)
    assert out_small.shape == (2, 1, 16, 16)
    assert out_small.dtype == jnp.float32
    assert jnp.allclose(out_small, _reference(x_small)), "Layout B mismatch"

    # Extra coverage: Layout A (W >= 128) with a multi-step, megacore-friendly grid.
    x_wide = jax.random.normal(jax.random.PRNGKey(1), (16, 1, 8, 128),
                               dtype=jnp.float32)
    out_wide = run(x_wide)
    jax.block_until_ready(out_wide)
    assert jnp.allclose(out_wide, _reference(x_wide)), "Layout A mismatch"

    # Extra coverage: Layout B with a multi-step pipelined grid.
    x_many = jax.random.normal(jax.random.PRNGKey(2), (32, 1, 16, 16),
                               dtype=jnp.float32)
    out_many = run(x_many)
    jax.block_until_ready(out_many)
    assert jnp.allclose(out_many, _reference(x_many)), "Layout B multi-step mismatch"

    print("KERNEL_OK")
</pallas_src>

<mosaic_0001>
module attributes {stable_mosaic.version = 11 : i64} {
  func.func @_sobel_kernel_flat(%arg0: i32, %arg1: memref<2x256xf32, #tpu.memory_space<vmem>>, %arg2: memref<2x256xf32, #tpu.memory_space<vmem>>) attributes {dimension_semantics = [#tpu.dimension_semantics<parallel>], iteration_bounds = array<i64: 1>, scalar_prefetch = 0 : i64, scratch_operands = 0 : i64, tpu.core_type = #tpu.core_type<tc>, window_params = [{transform_indices = @transform_0, window_bounds = array<i64: 2, 256>}, {transform_indices = @transform_1, window_bounds = array<i64: 2, 256>}]} {
    %c0 = arith.constant 0 : index
    %c0_0 = arith.constant 0 : index
    %0 = vector.load %arg1[%c0, %c0_0] : memref<2x256xf32, #tpu.memory_space<vmem>>, vector<2x256xf32>
    %1 = tpu.iota {dimensions = array<i32: 1>} : vector<1x256xi32>
    %c16_i32 = arith.constant 16 : i32
    %c0_i32 = arith.constant 0 : i32
    %2 = arith.cmpi eq, %c16_i32, %c0_i32 : i32
    %c1_i32 = arith.constant 1 : i32
    %3 = arith.select %2, %c1_i32, %c16_i32 : i32
    %4 = vector.broadcast %3 : i32 to vector<1x256xi32>
    %5 = arith.remsi %1, %4 : vector<1x256xi32>
    %c0_i32_1 = arith.constant 0 : i32
    %6 = vector.broadcast %c0_i32_1 : i32 to vector<1x256xi32>
    %7 = arith.cmpi ne, %5, %6 : vector<1x256xi32>
    %c0_i32_2 = arith.constant 0 : i32
    %8 = vector.broadcast %c0_i32_2 : i32 to vector<1x256xi32>
    %9 = arith.cmpi slt, %5, %8 : vector<1x256xi32>
    %c0_i32_3 = arith.constant 0 : i32
    %10 = arith.cmpi slt, %3, %c0_i32_3 : i32
    %11 = vector.broadcast %10 : i1 to vector<1x256xi1>
    %12 = vector.broadcast %11 : vector<1x256xi1> to vector<1x256xi1>
    %13 = arith.xori %9, %12 : vector<1x256xi1>
    %14 = arith.andi %13, %7 : vector<1x256xi1>
    %15 = vector.broadcast %3 : i32 to vector<1x256xi32>
    %16 = arith.addi %5, %15 : vector<1x256xi32>
    %17 = arith.select %14, %16, %5 : vector<1x256xi1>, vector<1x256xi32>
    %c16_i32_4 = arith.constant 16 : i32
    %18 = vector.broadcast %c16_i32_4 : i32 to vector<1x256xi32>
    %19 = arith.cmpi slt, %1, %18 : vector<1x256xi32>
    %c240_i32 = arith.constant 240 : i32
    %20 = vector.broadcast %c240_i32 : i32 to vector<1x256xi32>
    %21 = arith.cmpi sge, %1, %20 : vector<1x256xi32>
    %c0_i32_5 = arith.constant 0 : i32
    %22 = vector.broadcast %c0_i32_5 : i32 to vector<1x256xi32>
    %23 = arith.cmpi eq, %17, %22 : vector<1x256xi32>
    %c15_i32 = arith.constant 15 : i32
    %24 = vector.broadcast %c15_i32 : i32 to vector<1x256xi32>
    %25 = arith.cmpi eq, %17, %24 : vector<1x256xi32>
    %cst = arith.constant 0.000000e+00 : f32
    %26 = vector.broadcast %cst : f32 to vector<2x1xf32>
    %cst_6 = arith.constant 0.000000e+00 : f32
    %27 = vector.broadcast %cst_6 : f32 to vector<2x16xf32>
    %28 = vector.extract_strided_slice %0 {offsets = [0, 0], sizes = [2, 240], strides = [1, 1]} : vector<2x256xf32> to vector<2x240xf32>
    %29 = tpu.concatenate %27, %28 in 1 : vector<2x16xf32>, vector<2x240xf32> -> vector<2x256xf32>
    %cst_7 = arith.constant 0.000000e+00 : f32
    %30 = vector.shape_cast %19 : vector<1x256xi1> to vector<1x256xi1>
    %31 = vector.broadcast %30 : vector<1x256xi1> to vector<2x256xi1>
    %32 = vector.broadcast %cst_7 : f32 to vector<2x256xf32>
    %33 = arith.select %31, %32, %29 : vector<2x256xi1>, vector<2x256xf32>
    %34 = vector.extract_strided_slice %0 {offsets = [0, 16], sizes = [2, 240], strides = [1, 1]} : vector<2x256xf32> to vector<2x240xf32>
    %35 = tpu.concatenate %34, %27 in 1 : vector<2x240xf32>, vector<2x16xf32> -> vector<2x256xf32>
    %cst_8 = arith.constant 0.000000e+00 : f32
    %36 = vector.shape_cast %21 : vector<1x256xi1> to vector<1x256xi1>
    %37 = vector.broadcast %36 : vector<1x256xi1> to vector<2x256xi1>
    %38 = vector.broadcast %cst_8 : f32 to vector<2x256xf32>
    %39 = arith.select %37, %38, %35 : vector<2x256xi1>, vector<2x256xf32>
    %cst_9 = arith.constant 2.000000e+00 : f32
    %40 = vector.broadcast %cst_9 : f32 to vector<2x256xf32>
    %41 = arith.mulf %40, %0 : vector<2x256xf32>
    %42 = arith.addf %33, %41 : vector<2x256xf32>
    %43 = arith.addf %42, %39 : vector<2x256xf32>
    %44 = arith.subf %39, %33 : vector<2x256xf32>
    %45 = vector.extract_strided_slice %43 {offsets = [0, 1], sizes = [2, 255], strides = [1, 1]} : vector<2x256xf32> to vector<2x255xf32>
    %46 = tpu.concatenate %45, %26 in 1 : vector<2x255xf32>, vector<2x1xf32> -> vector<2x256xf32>
    %cst_10 = arith.constant 0.000000e+00 : f32
    %47 = vector.shape_cast %25 : vector<1x256xi1> to vector<1x256xi1>
    %48 = vector.broadcast %47 : vector<1x256xi1> to vector<2x256xi1>
    %49 = vector.broadcast %cst_10 : f32 to vector<2x256xf32>
    %50 = arith.select %48, %49, %46 : vector<2x256xi1>, vector<2x256xf32>
    %51 = vector.extract_strided_slice %43 {offsets = [0, 0], sizes = [2, 255], strides = [1, 1]} : vector<2x256xf32> to vector<2x255xf32>
    %52 = tpu.concatenate %26, %51 in 1 : vector<2x1xf32>, vector<2x255xf32> -> vector<2x256xf32>
    %cst_11 = arith.constant 0.000000e+00 : f32
    %53 = vector.shape_cast %23 : vector<1x256xi1> to vector<1x256xi1>
    %54 = vector.broadcast %53 : vector<1x256xi1> to vector<2x256xi1>
    %55 = vector.broadcast %cst_11 : f32 to vector<2x256xf32>
    %56 = arith.select %54, %55, %52 : vector<2x256xi1>, vector<2x256xf32>
    %57 = arith.subf %50, %56 : vector<2x256xf32>
    %58 = vector.extract_strided_slice %44 {offsets = [0, 0], sizes = [2, 255], strides = [1, 1]} : vector<2x256xf32> to vector<2x255xf32>
    %59 = tpu.concatenate %26, %58 in 1 : vector<2x1xf32>, vector<2x255xf32> -> vector<2x256xf32>
    %cst_12 = arith.constant 0.000000e+00 : f32
    %60 = vector.shape_cast %23 : vector<1x256xi1> to vector<1x256xi1>
    %61 = vector.broadcast %60 : vector<1x256xi1> to vector<2x256xi1>
    %62 = vector.broadcast %cst_12 : f32 to vector<2x256xf32>
    %63 = arith.select %61, %62, %59 : vector<2x256xi1>, vector<2x256xf32>
    %cst_13 = arith.constant 2.000000e+00 : f32
    %64 = vector.broadcast %cst_13 : f32 to vector<2x256xf32>
    %65 = arith.mulf %64, %44 : vector<2x256xf32>
    %66 = arith.addf %63, %65 : vector<2x256xf32>
    %67 = vector.extract_strided_slice %44 {offsets = [0, 1], sizes = [2, 255], strides = [1, 1]} : vector<2x256xf32> to vector<2x255xf32>
    %68 = tpu.concatenate %67, %26 in 1 : vector<2x255xf32>, vector<2x1xf32> -> vector<2x256xf32>
    %cst_14 = arith.constant 0.000000e+00 : f32
    %69 = vector.shape_cast %25 : vector<1x256xi1> to vector<1x256xi1>
    %70 = vector.broadcast %69 : vector<1x256xi1> to vector<2x256xi1>
    %71 = vector.broadcast %cst_14 : f32 to vector<2x256xf32>
    %72 = arith.select %70, %71, %68 : vector<2x256xi1>, vector<2x256xf32>
    %73 = arith.addf %66, %72 : vector<2x256xf32>
    %74 = arith.mulf %57, %57 : vector<2x256xf32>
    %75 = arith.mulf %73, %73 : vector<2x256xf32>
    %76 = arith.addf %74, %75 : vector<2x256xf32>
    %cst_15 = arith.constant 2.500000e-01 : f32
    %77 = vector.broadcast %cst_15 : f32 to vector<2x256xf32>
    %78 = arith.cmpf ogt, %76, %77 : vector<2x256xf32>
    %79 = arith.extui %78 : vector<2x256xi1> to vector<2x256xi32>
    %80 = arith.sitofp %79 : vector<2x256xi32> to vector<2x256xf32>
    %c0_16 = arith.constant 0 : index
    %c0_17 = arith.constant 0 : index
    %81 = vector.load %arg2[%c0_16, %c0_17] : memref<2x256xf32, #tpu.memory_space<vmem>>, vector<2x256xf32>
    tpu.vector_store %arg2[%c0_16, %c0_17], %80 {strides = array<i32>} : memref<2x256xf32, #tpu.memory_space<vmem>>, vector<2x256xf32>,
    return
  }
  func.func @transform_0(%arg0: i32) -> (i32, i32) {
    %c0_i32 = arith.constant 0 : i32
    %c0_i32_0 = arith.constant 0 : i32
    return %arg0, %c0_i32 : i32, i32
  }
  func.func @transform_1(%arg0: i32) -> (i32, i32) {
    %c0_i32 = arith.constant 0 : i32
    %c0_i32_0 = arith.constant 0 : i32
    return %arg0, %c0_i32 : i32, i32
  }
}

</mosaic_0001>

<bundles_post_ra>
// kernel: edge_detection.1
= control target key start
LH: loop header
LB: loop body
LE: loop exit
PB: predicated region body
PF: predicated region fallthrough
CT: control target
= control target key end

     0   :  { %v9_v0 = vlaneseq  ;;  %v200_v1 = vmov 1983009808   ;;  %s201_s8 = smov 16   ;;  %s202_s9 = smov 112   ;;  %vm57_vm0 = vcmask 130048   ;;  %vm72_vm1 = vcmask 916480   ;;  %s262_s0 = inlined_call_operand.vmem [shape: f32[2,256], index: 0, kind: input, shape index: {}]   ;;  %s263_s1 = inlined_call_operand.vmem [shape: f32[2,256], index: 1, kind: output, shape index: {}]  }
   0x1   :  { %v46_v2 = vunpack.c.l.s4 %v200_v1  ;;  %v8_v3 = vld [vmem:[%s262_s0] sm:$0xf]  ;;  %s203_s0 = smov 1   ;;  %s204_s10 = smov 127   ;;  %vm122_vm4 = vcmask 7168   ;;  %vm107_vm5 = vcmask 1039360  }
   0x2   :  { %v49_v4 = vshrl.u32 %v9_v0, 7  ;;  %v83_v6 = vmul.f32 2.0, %v8_v3  ;;  %v10_v11 = vand.u32 127, %v9_v0 }
   0x3   :  { %v47_v5 = vunpack.c.0.s8 %v46_v2 }
   0x4   :  { %v11_v12 = vadd.s32 128, %v10_v11  ;;  %vm36_vm3 = vcmp.lt.s32.totalorder %v10_v11, 16  ;;  %v16_v33 = vand.u32 15, %v10_v11 }
   0x5   :  { %v50_v7 = vsub.s32 %v47_v5, %v49_v4 }
   0x6   :  { %vm39_vm2 = vcmp.ge.s32.totalorder %v11_v12, 240  ;;  %v23_v32 = vand.u32 15, %v11_v12  ;;  %vm224_vm7 = vcmp.eq.s32.totalorder %v16_v33, 0  ;;  %vm230_vm8 = vcmp.eq.s32.totalorder %v16_v33, 15 }
   0x7   :  { %v51_v8 = vrot.slane %v8_v3, %v50_v7  ;;  %v91_v9 = vrot.slane %v83_v6, %v50_v7 }
   0x8   :  { %vm219_vm6 = vcmp.eq.s32.totalorder %v23_v32, 0  ;;  %vm234_vm9 = vcmp.eq.s32.totalorder %v23_v32, 15 }
   0x9   :  { %53 = vrot.lane.b32.xlu0 %v51_v8, %s201_s8  ;;  %v52_v10 = vcombine.high %v51_v8, %v51_v8  ;;  %v92_v15 = vcombine.high %v91_v9, %v91_v9 }
   0xb   :  { %55 = vrot.lane.b32.xlu1 %v52_v10, %s201_s8 }
   0xd   :  { %70 = vrot.lane.b32.xlu0 %v52_v10, %s202_s9  ;;  %v205_v10 = vmov 0.0  }
   0xf   :  { %68 = vrot.lane.b32.xlu1 %v51_v8, %s202_s9 }
  0x7b   :  { %v54_v13 = vpop.permute.xlu0 %53 }
  0x7c   :  { %v61_v16 = vsel %vm57_vm0, 0.0, %v54_v13 }
  0x7d   :  { %v56_v14 = vpop.permute.xlu1 %55  ;;  %v66_v22 = vsel %vm36_vm3, 0.0, %v61_v16 }
  0x7e   :  { %v58_v17 = vsel %vm57_vm0, %v54_v13, %v56_v14  ;;  %v95_v27 = vadd.f32 %v91_v9, %v66_v22 }
  0x7f   :  { %v71_v18 = vpop.permute.xlu0 %70  ;;  %v96_v23 = vadd.f32 %v92_v15, %v58_v17 }
  0x80   :  { %v76_v19 = vsel %vm72_vm1, %v71_v18, 0.0 }
  0x81   :  { %v82_v20 = vsel %vm39_vm2, 0.0, %v76_v19  ;;  %v69_v21 = vpop.permute.xlu1 %68 }
  0x82   :  { %v100_v24 = vsub.f32 %v82_v20, %v58_v17  ;;  %v73_v25 = vsel %vm72_vm1, %v69_v21, %v71_v18  ;;  %v98_v28 = vadd.f32 %v96_v23, %v82_v20 }
  0x83   :  { %v99_v26 = vsub.f32 %v73_v25, %v66_v22  ;;  %v97_v29 = vadd.f32 %v95_v27, %v73_v25 }
  0x84   :  { %139 = vrot.lane.b32.xlu1 %v100_v24, %s203_s0  ;;  %v148_v49 = vmul.f32 2.0, %v100_v24 }
  0x85   :  { %137 = vrot.lane.b32.xlu0 %v99_v26, %s203_s0  ;;  %v147_v53 = vmul.f32 2.0, %v99_v26 }
  0x88   :  { %105 = vrot.lane.b32.xlu1 %v98_v28, %s204_s10 }
  0x89   :  { %103 = vrot.lane.b32.xlu0 %v97_v29, %s204_s10 }
  0x8c   :  { %120 = vrot.lane.b32.xlu1 %v98_v28, %s203_s0 }
  0x8d   :  { %118 = vrot.lane.b32.xlu0 %v97_v29, %s203_s0 }
  0x90   :  { %153 = vrot.lane.b32.xlu1 %v100_v24, %s204_s10 }
  0x91   :  { %151 = vrot.lane.b32.xlu0 %v99_v26, %s204_s10 }
  0xf6   :  { %v140_v30 = vpop.permute.xlu1 %139 }
  0xf7   :  { %v138_v31 = vpop.permute.xlu0 %137 }
  0xf8   :  { %v141_v37 = vsel %vm122_vm4, %v138_v31, %v140_v30  ;;  %v144_v39 = vsel %vm122_vm4, 0.0, %v138_v31 }
  0xf9   :  { %v146_v45 = vsel %vm219_vm6, 0.0, %v141_v37  ;;  %v145_v50 = vsel %vm224_vm7, 0.0, %v144_v39 }
  0xfa   :  { %v106_v34 = vpop.permute.xlu1 %105  ;;  %v150_v56 = vadd.f32 %v148_v49, %v146_v45  ;;  %v149_v61 = vadd.f32 %v147_v53, %v145_v50 }
  0xfb   :  { %v104_v35 = vpop.permute.xlu0 %103  ;;  %v111_v41 = vsel %vm107_vm5, %v106_v34, 0.0 }
  0xfc   :  { %v108_v46 = vsel %vm107_vm5, %v104_v35, %v106_v34  ;;  %v117_v54 = vsel %vm234_vm9, 0.0, %v111_v41 }
  0xfd   :  { %v116_v57 = vsel %vm230_vm8, 0.0, %v108_v46 }
  0xfe   :  { %v121_v40 = vpop.permute.xlu1 %120 }
  0xff   :  { %v119_v43 = vpop.permute.xlu0 %118 }
 0x100   :  { %v123_v47 = vsel %vm122_vm4, %v119_v43, %v121_v40  ;;  %v126_v48 = vsel %vm122_vm4, 0.0, %v119_v43 }
 0x101   :  { %v131_v51 = vsel %vm224_vm7, 0.0, %v126_v48  ;;  %v132_v52 = vsel %vm219_vm6, 0.0, %v123_v47 }
 0x102   :  { %v154_v55 = vpop.permute.xlu1 %153  ;;  %v134_v58 = vsub.f32 %v117_v54, %v132_v52  ;;  %v133_v62 = vsub.f32 %v116_v57, %v131_v51 }
 0x103   :  { %v158_v59 = vsel %vm107_vm5, %v154_v55, 0.0  ;;  %v152_v60 = vpop.permute.xlu0 %151 }
 0x104   :  { %v160_v63 = vsel %vm234_vm9, 0.0, %v158_v59  ;;  %v155_v0 = vsel %vm107_vm5, %v152_v60, %v154_v55  ;;  %v164_v4 = vmul.f32 %v134_v58, %v134_v58  ;;  %v163_v6 = vmul.f32 %v133_v62, %v133_v62 }
 0x105   :  { %v162_v1 = vadd.f32 %v160_v63, %v150_v56  ;;  %v159_v2 = vsel %vm230_vm8, 0.0, %v155_v0 }
 0x106   :  { %v161_v3 = vadd.f32 %v159_v2, %v149_v61 }
 0x107   :  { %v166_v5 = vmul.f32 %v162_v1, %v162_v1 }
 0x108   :  { %v165_v7 = vmul.f32 %v161_v3, %v161_v3 }
 0x109   :  { %v168_v8 = vadd.f32 %v166_v5, %v164_v4 }
 0x10a   :  { %v167_v9 = vadd.f32 %v165_v7, %v163_v6 }
 0x10b   :  { %vm170_vm10 = vcmp.gt.f32.partialorder %v168_v8, 0.25 }
 0x10c   :  { %v192_v11 = vsel %vm170_vm10, 1.0, %v205_v10  ;;  %vm169_vm11 = vcmp.gt.f32.partialorder %v167_v9, 0.25 }
 0x10d   :  { %v191_v12 = vsel %vm169_vm11, 1.0, %v205_v10 }
 0x10e   :  { %v177_v13 = vcombine.low %v191_v12, %v192_v11 }
 0x110   :  { %193 = vst.sshfl [vmem:[%s263_s1] sm:$0x33 pattern:$0x76325410] %v177_v13 }

</bundles_post_ra>
